<compile_context>
chip_gen: v7x
topology: tpu7x:2x2x1
jax: 0.10.0
libtpu: 0.0.40
codegen_flags: <defaults>
</compile_context>

<pallas_src>
import functools

import jax
import jax.numpy as jnp
from jax.experimental import pallas as pl
from jax.experimental.pallas import tpu as pltpu


LANE = 128
DEFAULT_BLOCK_BATCH = 2048  # per-row VMEM cost is only a few KiB -> big tiles are cheap


def _round_up(n, m):
    return ((n + m - 1) // m) * m


def _choose_tb(batch, block_batch):
    """Batch-tile size: full batch for tiny B, else >=2 grid steps (v7x megacore),
    multiples of 8 sublanes, capped at block_batch."""
    if batch <= 8:
        return batch  # single full-batch block (block dim == full array dim)
    half = _round_up((batch + 1) // 2, 8)
    return min(block_batch, half)


def actor_kernel(x_ref, w1_ref, b1_ref, w2_ref, b2_ref, w3_ref, b3_ref, out_ref):
    # bf16 MXU operands, f32 accumulation; all elementwise math stays f32.
    x = x_ref[...].astype(jnp.bfloat16)

    # l1 + ReLU
    h1 = jnp.dot(x, w1_ref[...], preferred_element_type=jnp.float32) + b1_ref[...]
    h1 = jnp.maximum(h1, 0.0)

    # l2 + ReLU
    h2 = jnp.dot(h1.astype(jnp.bfloat16), w2_ref[...],
                 preferred_element_type=jnp.float32) + b2_ref[...]
    h2 = jnp.maximum(h2, 0.0)

    # fc (lane-padded logits: pad columns have zero weights and -inf f32 bias)
    logits = jnp.dot(h2.astype(jnp.bfloat16), w3_ref[...],
                     preferred_element_type=jnp.float32) + b3_ref[...]

    # Numerically stable softmax; exp(-inf - m) == 0 on pad columns, so the
    # denominator over 128 lanes equals the denominator over the real columns.
    m = jnp.max(logits, axis=-1, keepdims=True)
    e = jnp.exp(logits - m)
    denom = jnp.sum(e, axis=-1, keepdims=True)

    # Store only the real output columns (exact divide: rows sum to 1).
    n_out = out_ref.shape[-1]
    out_ref[...] = (e[:, :n_out] / denom).astype(out_ref.dtype)


def prep_actor_params(params):
    """One-time layout prep (hoisted out of the per-call path).

    Transposes weights to (in, out) and casts them to bf16, reshapes biases to
    (1, out) in f32, and pads hidden/output dims to a multiple of 128 lanes.
    Hidden padding uses zero weights + zero bias (exact through ReLU); output
    padding uses zero weights + -inf f32 bias so softmax pad columns are exact 0.
    """
    w1, b1, w2, b2, w3, b3 = params
    hidden, in_feat = w1.shape
    out_size = w3.shape[0]

    hid_pad = _round_up(hidden, LANE)
    out_pad = _round_up(out_size, LANE)

    bf = jnp.bfloat16
    w1_t = jnp.zeros((in_feat, hid_pad), bf).at[:, :hidden].set(w1.T.astype(bf))
    b1_r = jnp.zeros((1, hid_pad), jnp.float32).at[:, :hidden].set(b1)

    w2_t = jnp.zeros((hid_pad, hid_pad), bf).at[:hidden, :hidden].set(w2.T.astype(bf))
    b2_r = jnp.zeros((1, hid_pad), jnp.float32).at[:, :hidden].set(b2)

    w3_t = jnp.zeros((hid_pad, out_pad), bf).at[:hidden, :out_size].set(w3.T.astype(bf))
    b3_r = jnp.full((1, out_pad), -jnp.inf, jnp.float32).at[:, :out_size].set(b3)

    return (w1_t, b1_r, w2_t, b2_r, w3_t, b3_r)


@functools.partial(jax.jit, static_argnames=("output_size", "block_batch"))
def actor_forward(feature_vector, prepped, output_size, block_batch=DEFAULT_BLOCK_BATCH):
    """Fused Actor forward pass: one pallas_call on pre-laid-out params.
    Returns (B, output_size) softmax probabilities (same semantics as the module)."""
    w1_t, b1_r, w2_t, b2_r, w3_t, b3_r = prepped
    B, F = feature_vector.shape

    tb = _choose_tb(B, block_batch)
    grid = (pl.cdiv(B, tb),)

    def resident(shape):
        # Full-array block, constant index -> stays VMEM-resident across grid steps.
        return pl.BlockSpec(shape, lambda i: (0, 0))

    return pl.pallas_call(
        actor_kernel,
        out_shape=jax.ShapeDtypeStruct((B, output_size), jnp.float32),
        grid=grid,
        in_specs=[
            pl.BlockSpec((tb, F), lambda i: (i, 0)),
            resident(w1_t.shape), resident(b1_r.shape),
            resident(w2_t.shape), resident(b2_r.shape),
            resident(w3_t.shape), resident(b3_r.shape),
        ],
        out_specs=pl.BlockSpec((tb, output_size), lambda i: (i, 0)),
        compiler_params=pltpu.CompilerParams(
            dimension_semantics=("parallel",)),
    )(feature_vector, w1_t, b1_r, w2_t, b2_r, w3_t, b3_r)


def init_actor_params(key, feature_size, x_static_size, hidden_size, output_size):
    """Deterministic init mimicking PyTorch nn.Linear default U[-1/sqrt(fan_in), +1/sqrt(fan_in)]."""
    full_feature = feature_size + x_static_size  # self.feature_size in the module

    def linear_init(k, out_f, in_f):
        kw, kb = jax.random.split(k)
        bound = 1.0 / jnp.sqrt(in_f)
        w = jax.random.uniform(kw, (out_f, in_f), jnp.float32, -bound, bound)
        b = jax.random.uniform(kb, (out_f,), jnp.float32, -bound, bound)
        return w, b

    k1, k2, k3 = jax.random.split(key, 3)
    w1, b1 = linear_init(k1, hidden_size, full_feature)
    w2, b2 = linear_init(k2, hidden_size, hidden_size)
    w3, b3 = linear_init(k3, output_size, hidden_size)
    return (w1, b1, w2, b2, w3, b3)


def _reference_forward(x, params):
    """Pure-JAX reference of the same math (bf16 matmul operands, f32 accumulation)."""
    w1, b1, w2, b2, w3, b3 = params

    def bf(v):
        return v.astype(jnp.bfloat16).astype(jnp.float32)

    h = jnp.maximum(bf(x) @ bf(w1.T) + b1, 0.0)
    h = jnp.maximum(bf(h) @ bf(w2.T) + b2, 0.0)
    logits = bf(h) @ bf(w3.T) + b3
    return jax.nn.softmax(logits, axis=1)


if __name__ == "__main__":
    # Module hyperparameters (small, consistent with the forward pass).
    input_size = 16      # unused in forward
    feature_size = 24
    x_static_size = 8
    hidden_size = 32
    output_size = 8
    extra_num = 0        # unused in forward

    full_feature = feature_size + x_static_size

    key = jax.random.PRNGKey(0)
    k_params, k_x = jax.random.split(key)
    params = init_actor_params(k_params, feature_size, x_static_size,
                               hidden_size, output_size)
    prepped = prep_actor_params(params)   # one-time layout prep (hoisted)

    # Exercise: single-block path (B=4), two-step grid with a partial last tile
    # (B=20), and two even grid steps (B=48, v7x megacore split).
    for batch in (4, 20, 48):
        kx = jax.random.fold_in(k_x, batch)
        feature_vector = jax.random.normal(kx, (batch, full_feature), jnp.float32)

        action_prob = actor_forward(feature_vector, prepped, output_size)
        action_prob = jax.block_until_ready(action_prob)

        ref = _reference_forward(feature_vector, params)
        assert action_prob.shape == (batch, output_size)
        assert jnp.allclose(action_prob, ref, atol=5e-3, rtol=5e-3)
        assert jnp.allclose(jnp.sum(action_prob, axis=1), 1.0, atol=1e-3)
        assert bool(jnp.all(jnp.isfinite(action_prob)))

    print("KERNEL_OK")
</pallas_src>

<mosaic_0001>
module attributes {stable_mosaic.version = 11 : i64} {
  func.func @actor_kernel(%arg0: i32, %arg1: memref<4x32xf32, #tpu.memory_space<vmem>>, %arg2: memref<32x128xbf16, #tpu.memory_space<vmem>>, %arg3: memref<1x128xf32, #tpu.memory_space<vmem>>, %arg4: memref<128x128xbf16, #tpu.memory_space<vmem>>, %arg5: memref<1x128xf32, #tpu.memory_space<vmem>>, %arg6: memref<128x128xbf16, #tpu.memory_space<vmem>>, %arg7: memref<1x128xf32, #tpu.memory_space<vmem>>, %arg8: memref<4x8xf32, #tpu.memory_space<vmem>>) attributes {dimension_semantics = [#tpu.dimension_semantics<parallel>], iteration_bounds = array<i64: 1>, scalar_prefetch = 0 : i64, scratch_operands = 0 : i64, tpu.core_type = #tpu.core_type<tc>, window_params = [{transform_indices = @transform_0, window_bounds = array<i64: 4, 32>}, {pipeline_mode = #tpu.pipeline_mode<synchronous>, transform_indices = @transform_1, window_bounds = array<i64: 32, 128>}, {pipeline_mode = #tpu.pipeline_mode<synchronous>, transform_indices = @transform_2, window_bounds = array<i64: 1, 128>}, {pipeline_mode = #tpu.pipeline_mode<synchronous>, transform_indices = @transform_3, window_bounds = array<i64: 128, 128>}, {pipeline_mode = #tpu.pipeline_mode<synchronous>, transform_indices = @transform_4, window_bounds = array<i64: 1, 128>}, {pipeline_mode = #tpu.pipeline_mode<synchronous>, transform_indices = @transform_5, window_bounds = array<i64: 128, 128>}, {pipeline_mode = #tpu.pipeline_mode<synchronous>, transform_indices = @transform_6, window_bounds = array<i64: 1, 128>}, {transform_indices = @transform_7, window_bounds = array<i64: 4, 8>}]} {
    %c0 = arith.constant 0 : index
    %c0_0 = arith.constant 0 : index
    %0 = vector.load %arg1[%c0, %c0_0] : memref<4x32xf32, #tpu.memory_space<vmem>>, vector<4x32xf32>
    %1 = arith.truncf %0 : vector<4x32xf32> to vector<4x32xbf16>
    %c0_1 = arith.constant 0 : index
    %c0_2 = arith.constant 0 : index
    %2 = vector.load %arg2[%c0_1, %c0_2] : memref<32x128xbf16, #tpu.memory_space<vmem>>, vector<32x128xbf16>
    %cst = arith.constant dense<0.000000e+00> : vector<4x128xf32>
    %3 = tpu.matmul %1, %2, %cst {dimension_numbers = #tpu.dot_dimension_numbers<[1], [0], [0], [1], [0, 0, 1, 1], [], []>} : vector<4x32xbf16>, vector<32x128xbf16>, vector<4x128xf32> -> vector<4x128xf32>
    %c0_3 = arith.constant 0 : index
    %c0_4 = arith.constant 0 : index
    %4 = vector.load %arg3[%c0_3, %c0_4] : memref<1x128xf32, #tpu.memory_space<vmem>>, vector<1x128xf32>
    %5 = vector.broadcast %4 : vector<1x128xf32> to vector<4x128xf32>
    %6 = arith.addf %3, %5 : vector<4x128xf32>
    %cst_5 = arith.constant 0.000000e+00 : f32
    %7 = vector.broadcast %cst_5 : f32 to vector<4x128xf32>
    %8 = arith.maximumf %6, %7 : vector<4x128xf32>
    %9 = arith.truncf %8 : vector<4x128xf32> to vector<4x128xbf16>
    %c0_6 = arith.constant 0 : index
    %c0_7 = arith.constant 0 : index
    %10 = vector.load %arg4[%c0_6, %c0_7] : memref<128x128xbf16, #tpu.memory_space<vmem>>, vector<128x128xbf16>
    %cst_8 = arith.constant dense<0.000000e+00> : vector<4x128xf32>
    %11 = tpu.matmul %9, %10, %cst_8 {dimension_numbers = #tpu.dot_dimension_numbers<[1], [0], [0], [1], [0, 0, 1, 1], [], []>} : vector<4x128xbf16>, vector<128x128xbf16>, vector<4x128xf32> -> vector<4x128xf32>
    %c0_9 = arith.constant 0 : index
    %c0_10 = arith.constant 0 : index
    %12 = vector.load %arg5[%c0_9, %c0_10] : memref<1x128xf32, #tpu.memory_space<vmem>>, vector<1x128xf32>
    %13 = vector.broadcast %12 : vector<1x128xf32> to vector<4x128xf32>
    %14 = arith.addf %11, %13 : vector<4x128xf32>
    %cst_11 = arith.constant 0.000000e+00 : f32
    %15 = vector.broadcast %cst_11 : f32 to vector<4x128xf32>
    %16 = arith.maximumf %14, %15 : vector<4x128xf32>
    %17 = arith.truncf %16 : vector<4x128xf32> to vector<4x128xbf16>
    %c0_12 = arith.constant 0 : index
    %c0_13 = arith.constant 0 : index
    %18 = vector.load %arg6[%c0_12, %c0_13] : memref<128x128xbf16, #tpu.memory_space<vmem>>, vector<128x128xbf16>
    %cst_14 = arith.constant dense<0.000000e+00> : vector<4x128xf32>
    %19 = tpu.matmul %17, %18, %cst_14 {dimension_numbers = #tpu.dot_dimension_numbers<[1], [0], [0], [1], [0, 0, 1, 1], [], []>} : vector<4x128xbf16>, vector<128x128xbf16>, vector<4x128xf32> -> vector<4x128xf32>
    %c0_15 = arith.constant 0 : index
    %c0_16 = arith.constant 0 : index
    %20 = vector.load %arg7[%c0_15, %c0_16] : memref<1x128xf32, #tpu.memory_space<vmem>>, vector<1x128xf32>
    %21 = vector.broadcast %20 : vector<1x128xf32> to vector<4x128xf32>
    %22 = arith.addf %19, %21 : vector<4x128xf32>
    %cst_17 = arith.constant dense<0xFF800000> : vector<4xf32>
    %23 = vector.multi_reduction <maximumf>, %22, %cst_17 [1] : vector<4x128xf32> to vector<4xf32>
    %24 = vector.shape_cast %23 : vector<4xf32> to vector<4x1xf32>
    %25 = vector.broadcast %24 : vector<4x1xf32> to vector<4x128xf32>
    %26 = arith.subf %22, %25 : vector<4x128xf32>
    %27 = math.exp %26 : vector<4x128xf32>
    %cst_18 = arith.constant dense<0.000000e+00> : vector<4xf32>
    %28 = vector.multi_reduction <add>, %27, %cst_18 [1] : vector<4x128xf32> to vector<4xf32>
    %29 = vector.shape_cast %28 : vector<4xf32> to vector<4x1xf32>
    %30 = vector.extract_strided_slice %27 {offsets = [0, 0], sizes = [4, 8], strides = [1, 1]} : vector<4x128xf32> to vector<4x8xf32>
    %31 = vector.broadcast %29 : vector<4x1xf32> to vector<4x8xf32>
    %32 = arith.divf %30, %31 : vector<4x8xf32>
    %c0_19 = arith.constant 0 : index
    %c0_20 = arith.constant 0 : index
    %33 = vector.load %arg8[%c0_19, %c0_20] : memref<4x8xf32, #tpu.memory_space<vmem>>, vector<4x8xf32>
    tpu.vector_store %arg8[%c0_19, %c0_20], %32 {strides = array<i32>} : memref<4x8xf32, #tpu.memory_space<vmem>>, vector<4x8xf32>,
    return
  }
  func.func @transform_0(%arg0: i32) -> (i32, i32) {
    %c0_i32 = arith.constant 0 : i32
    %c0_i32_0 = arith.constant 0 : i32
    return %arg0, %c0_i32 : i32, i32
  }
  func.func @transform_1(%arg0: i32) -> (i32, i32) {
    %c0_i32 = arith.constant 0 : i32
    %c0_i32_0 = arith.constant 0 : i32
    %c0_i32_1 = arith.constant 0 : i32
    return %c0_i32, %c0_i32_0 : i32, i32
  }
  func.func @transform_2(%arg0: i32) -> (i32, i32) {
    %c0_i32 = arith.constant 0 : i32
    %c0_i32_0 = arith.constant 0 : i32
    %c0_i32_1 = arith.constant 0 : i32
    return %c0_i32, %c0_i32_0 : i32, i32
  }
  func.func @transform_3(%arg0: i32) -> (i32, i32) {
    %c0_i32 = arith.constant 0 : i32
    %c0_i32_0 = arith.constant 0 : i32
    %c0_i32_1 = arith.constant 0 : i32
    return %c0_i32, %c0_i32_0 : i32, i32
  }
  func.func @transform_4(%arg0: i32) -> (i32, i32) {
    %c0_i32 = arith.constant 0 : i32
    %c0_i32_0 = arith.constant 0 : i32
    %c0_i32_1 = arith.constant 0 : i32
    return %c0_i32, %c0_i32_0 : i32, i32
  }
  func.func @transform_5(%arg0: i32) -> (i32, i32) {
    %c0_i32 = arith.constant 0 : i32
    %c0_i32_0 = arith.constant 0 : i32
    %c0_i32_1 = arith.constant 0 : i32
    return %c0_i32, %c0_i32_0 : i32, i32
  }
  func.func @transform_6(%arg0: i32) -> (i32, i32) {
    %c0_i32 = arith.constant 0 : i32
    %c0_i32_0 = arith.constant 0 : i32
    %c0_i32_1 = arith.constant 0 : i32
    return %c0_i32, %c0_i32_0 : i32, i32
  }
  func.func @transform_7(%arg0: i32) -> (i32, i32) {
    %c0_i32 = arith.constant 0 : i32
    %c0_i32_0 = arith.constant 0 : i32
    return %arg0, %c0_i32 : i32, i32
  }
}

</mosaic_0001>

<bundles_post_ra>
// kernel: actor_forward.1
= control target key start
LH: loop header
LB: loop body
LE: loop exit
PB: predicated region body
PF: predicated region fallthrough
CT: control target
= control target key end

     0   :  { %12 = vsyncpa [#allocation3], 0  ;;  %s798_s0 = inlined_call_operand.hbm [shape: f32[4,32], index: 0, kind: input, shape index: {}]   ;;  %s799_s1 = inlined_call_operand.hbm [shape: bf16[32,128], index: 1, kind: input, shape index: {}]   ;;  %s800_s2 = inlined_call_operand.vmem [shape: f32[1,128], index: 2, kind: input, shape index: {}]   ;;  %s801_s3 = inlined_call_operand.hbm [shape: bf16[128,128], index: 3, kind: input, shape index: {}]   ;;  %s802_s4 = inlined_call_operand.vmem [shape: f32[1,128], index: 4, kind: input, shape index: {}]   ;;  %s803_s5 = inlined_call_operand.hbm [shape: bf16[128,128], index: 5, kind: input, shape index: {}]   ;;  %s804_s6 = inlined_call_operand.vmem [shape: f32[1,128], index: 6, kind: input, shape index: {}]   ;;  %s805_s7 = inlined_call_operand.hbm [shape: f32[4,8], index: 7, kind: output, shape index: {}]  }
   0x1   :  { %13 = vsyncpa [#allocation6], 0 }
   0x2   :  { %14 = vsyncpa [#allocation9], 0 }
   0x3   :  { %15 = vsyncpa [#allocation4], 0  ;;  %s647_s24 = smov [#allocation5]   ;;  %s529_s28 = scalar_lea.hbm %s799_s1, 256 }
   0x4   :  { %s31_s25 = sshll.u32 %s647_s24, 4  ;;  %p530_p0 = scmp.ne.s32.totalorder %s799_s1, %s529_s28  ;;  %s32_s25 = int_to_ptr.vmem [resolvable:$true] %s31_s25 }
   0x5   :  { %p533_p1 = scmp.lt.u32.totalorder %s529_s28, %s799_s1 }
   0x7   :  { %p535_p2 = pnand %p533_p1, %p530_p0 }
   0x9   :  { %538 = shalt.err (!%p535_p2)
}
   0xa   :  { %s539_s10 = scalar_lea.vmem %s32_s25, 256  ;;  %p544_p4 = scmp.lt.s32.totalorder %s32_s25, %s32_s25 }
   0xb   :  { %p540_p3 = scmp.ne.s32.totalorder %s32_s25, %s539_s10  ;;  %p545_p5 = scmp.lt.s32.totalorder %s539_s10, %s539_s10 }
   0xd   :  { %p546_p6 = por %p545_p5, %p544_p4 }
   0xf   :  { %p547_p7 = pnand %p546_p6, %p540_p3 }
  0x11   :  { %550 = shalt.err (!%p547_p7)
}
  0x12   :  { %s648_s11 = smov 64   ;;  %s649_s12 = smov 4  }
  0x13   :  { %37 = dma.hbm_to_vmem [thread:$0]  %s799_s1, 256, %s32_s25, [#allocation6], %s648_s11, %s648_s11, %s649_s12  }
  0x14   :  { %s650_s15 = smov [#allocation2]   ;;  %s651_s17 = smov [#allocation7]  }
  0x15   :  { %s22_s16 = sshll.u32 %s650_s15, 4  ;;  %s45_s18 = sshll.u32 %s651_s17, 4  ;;  %s23_s16 = int_to_ptr.vmem [resolvable:$true] %s22_s16  ;;  %s46_s18 = int_to_ptr.vmem [resolvable:$true] %s45_s18 }
  0x16   :  { %s551_s21 = scalar_lea.hbm %s798_s0, 64 }
  0x17   :  { %p552_p8 = scmp.ne.s32.totalorder %s798_s0, %s551_s21  ;;  %p555_p9 = scmp.lt.u32.totalorder %s551_s21, %s798_s0 }
  0x19   :  { %p557_p10 = pnand %p555_p9, %p552_p8 }
  0x1b   :  { %560 = shalt.err (!%p557_p10)
}
  0x1c   :  { %s561_s1 = scalar_lea.vmem %s23_s16, 64  ;;  %p566_p12 = scmp.lt.s32.totalorder %s23_s16, %s23_s16 }
  0x1d   :  { %p562_p11 = scmp.ne.s32.totalorder %s23_s16, %s561_s1  ;;  %p567_p13 = scmp.lt.s32.totalorder %s561_s1, %s561_s1 }
  0x1f   :  { %p568_p0 = por %p567_p13, %p566_p12 }
  0x21   :  { %p569_p1 = pnand %p568_p0, %p562_p11 }
  0x23   :  { %572 = shalt.err (!%p569_p1)
}
  0x24   :  { %25 = dma.hbm_to_vmem [thread:$0]  %s798_s0, 64, %s23_s16, [#allocation3]  }
  0x25   :  { %s573_s30 = scalar_lea.hbm %s801_s3, 1024 }
  0x26   :  { %p574_p2 = scmp.ne.s32.totalorder %s801_s3, %s573_s30  ;;  %p577_p3 = scmp.lt.u32.totalorder %s573_s30, %s801_s3 }
  0x28   :  { %p579_p4 = pnand %p577_p3, %p574_p2 }
  0x2a   :  { %582 = shalt.err (!%p579_p4)
}
  0x2b   :  { %s583_s14 = scalar_lea.vmem %s46_s18, 1024  ;;  %p588_p6 = scmp.lt.s32.totalorder %s46_s18, %s46_s18 }
  0x2c   :  { %p584_p5 = scmp.ne.s32.totalorder %s46_s18, %s583_s14  ;;  %p589_p7 = scmp.lt.s32.totalorder %s583_s14, %s583_s14 }
  0x2e   :  { %p590_p8 = por %p589_p7, %p588_p6 }
  0x30   :  { %p591_p9 = pnand %p590_p8, %p584_p5 }
  0x32   :  { %594 = shalt.err (!%p591_p9)
}
  0x33   :  { %51 = dma.hbm_to_vmem [thread:$0]  %s801_s3, 1024, %s46_s18, [#allocation6], %s648_s11, %s648_s11, %s649_s12  }
  0x34   :  { %s652_s16 = smov [#allocation8]   ;;  %s595_s21 = scalar_lea.hbm %s803_s5, 1024 }
  0x35   :  { %s59_s17 = sshll.u32 %s652_s16, 4  ;;  %p596_p10 = scmp.ne.s32.totalorder %s803_s5, %s595_s21  ;;  %s60_s17 = int_to_ptr.vmem [resolvable:$true] %s59_s17 }
  0x36   :  { %p599_p11 = scmp.lt.u32.totalorder %s595_s21, %s803_s5 }
  0x38   :  { %p601_p12 = pnand %p599_p11, %p596_p10 }
  0x3a   :  { %604 = shalt.err (!%p601_p12)
}
  0x3b   :  { %s605_s1 = scalar_lea.vmem %s60_s17, 1024  ;;  %p610_p0 = scmp.lt.s32.totalorder %s60_s17, %s60_s17 }
  0x3c   :  { %p606_p13 = scmp.ne.s32.totalorder %s60_s17, %s605_s1  ;;  %p611_p1 = scmp.lt.s32.totalorder %s605_s1, %s605_s1 }
  0x3e   :  { %p612_p2 = por %p611_p1, %p610_p0 }
  0x40   :  { %p613_p3 = pnand %p612_p2, %p606_p13 }
  0x42   :  { %616 = shalt.err (!%p613_p3)
}
  0x43   :  { %65 = dma.hbm_to_vmem [thread:$0]  %s803_s5, 1024, %s60_s17, [#allocation9], %s648_s11, %s648_s11, %s649_s12  }
  0x44   :  { %639 = dma.done.wait [#allocation3], 64  }
  0x45   :  { %640 = vsyncadd [#allocation3], 4294967232 }
  0x46   :  { %641 = dma.done.wait [#allocation6], 1280  }
  0x47   :  { %642 = vsyncadd [#allocation6], 4294966016 }
  0x48   :  { %643 = dma.done.wait [#allocation9], 1024  }
  0x49   :  { %644 = vsyncadd [#allocation9], 4294966272  ;;  %v653_v0 = vmov 0.0   ;;  %vm654_vm0 = vmmov 0   ;;  %v507_v1 = vld [vmem:[#allocation5] sm:$0xff]   ;;  %v508_v2 = vld [vmem:[#allocation5 + $0x8] sm:$0xff]  }
  0x4a   :  { %450 = vmatprep.subr.bf16.mxu0 %v653_v0  ;;  %454 = vmatprep.mubr.msk.bf16.mxu0 %vm654_vm0, %v653_v0  ;;  %v81_v3 = vld [vmem:[#allocation2] sm:$0xf]  ;;  %v509_v4 = vld [vmem:[#allocation7] sm:$0xff]   ;;  %vm106_vm1 = vcmask 261120   ;;  %v511_v7 = vld [vmem:[#allocation7 + $0x10] sm:$0xff]   ;;  %vm376_vm2 = vcmask 1043456  }
  0x4b   :  { %458 = vmatprep.subr.bf16.mxu1 %v653_v0  ;;  %474 = vmatprep.mubr.msk.bf16.mxu1 %vm654_vm0, %v653_v0  ;;  %v82_v5 = vpack.c.bf16 %v81_v3, %v81_v3  ;;  %v510_v6 = vld [vmem:[#allocation7 + $0x8] sm:$0xff]   ;;  %v512_v8 = vld [vmem:[#allocation7 + $0x18] sm:$0xff]   ;;  %v513_v9 = vld [vmem:[#allocation7 + $0x20] sm:$0xff]   ;;  %vm388_vm3 = vcmask 60416  }
  0x4c   :  { %451 = vmatpush3.bf16.msra.mxu0 %v507_v1  ;;  %459 = vmatpush3.bf16.msra.mxu1 %v509_v4  ;;  %v514_v10 = vld [vmem:[#allocation7 + $0x28] sm:$0xff]   ;;  %v515_v11 = vld [vmem:[#allocation7 + $0x30] sm:$0xff]   ;;  %v516_v12 = vld [vmem:[#allocation7 + $0x38] sm:$0xff]  }
  0x4d   :  { %452 = vmatprep.subr.bf16.mxu0 %v653_v0  ;;  %460 = vmatprep.subr.bf16.mxu1 %v653_v0  ;;  %v517_v13 = vld [vmem:[#allocation8] sm:$0xff]   ;;  %v518_v14 = vld [vmem:[#allocation8 + $0x8] sm:$0xff]   ;;  %v519_v15 = vld [vmem:[#allocation8 + $0x10] sm:$0xff]  }
  0x4e   :  { %v520_v16 = vld [vmem:[#allocation8 + $0x18] sm:$0xff]   ;;  %v521_v17 = vld [vmem:[#allocation8 + $0x20] sm:$0xff]   ;;  %v522_v18 = vld [vmem:[#allocation8 + $0x28] sm:$0xff]  }
  0x4f   :  { %v407_v19 = vld [vmem:[%s800_s2] ss:$0 sm:$0xff]  ;;  %v523_v27 = vld [vmem:[#allocation8 + $0x30] sm:$0xff]   ;;  %v524_v28 = vld [vmem:[#allocation8 + $0x38] sm:$0xff]  }
  0x50   :  { %453 = vmatpush3.bf16.msra.mxu0 %v508_v2  ;;  %461 = vmatpush3.bf16.msra.mxu1 %v510_v6  ;;  %v411_v29 = vld [vmem:[%s802_s4] ss:$0 sm:$0xff]  ;;  %s655_s4 = smov [#allocation10]  }
  0x51   :  { %478 = vmatprep.subr.bf16.mxu0 %v653_v0  ;;  %462 = vmatprep.subr.bf16.mxu1 %v653_v0  ;;  %v420_v37 = vld [vmem:[%s804_s6] ss:$0 sm:$0xff]  ;;  %s396_s28 = sshll.u32 %s655_s4, 4  ;;  %s397_s28 = int_to_ptr.vmem [resolvable:$true] %s396_s28 }
  0x52   :  { %s617_s6 = scalar_lea.vmem %s397_s28, 64  ;;  %p622_p5 = scmp.lt.s32.totalorder %s397_s28, %s397_s28 }
  0x53   :  { %455 = vmatmul.mubr.msk.bf16.vlgmr.msra.gmra.mrb[0].mxu0 %vm106_vm1, %v82_v5  ;;  %p618_p4 = scmp.ne.s32.totalorder %s397_s28, %s617_s6  ;;  %p623_p6 = scmp.lt.s32.totalorder %s617_s6, %s617_s6 }
  0x54   :  { %494 = vmatprep.mubr.msk.bf16.mxu0 %vm654_vm0, %v653_v0  ;;  %463 = vmatpush3.bf16.msra.mxu1 %v511_v7 }
  0x55   :  { %464 = vmatprep.subr.bf16.mxu1 %v653_v0  ;;  %479 = vmatpush3.bf16.msra.mxu0 %v517_v13  ;;  %p624_p7 = por %p623_p6, %p622_p5 }
  0x56   :  { %480 = vmatprep.subr.bf16.mxu0 %v653_v0 }
  0x57   :  { %p625_p8 = pnand %p624_p7, %p618_p4 }
  0x58   :  { %465 = vmatpush3.bf16.msra.mxu1 %v512_v8 }
  0x59   :  { %466 = vmatprep.subr.bf16.mxu1 %v653_v0  ;;  %481 = vmatpush3.bf16.msra.mxu0 %v518_v14 }
  0x5a   :  { %482 = vmatprep.subr.bf16.mxu0 %v653_v0 }
  0x5c   :  { %467 = vmatpush3.bf16.msra.mxu1 %v513_v9 }
  0x5d   :  { %468 = vmatprep.subr.bf16.mxu1 %v653_v0  ;;  %483 = vmatpush3.bf16.msra.mxu0 %v519_v15 }
  0x5e   :  { %484 = vmatprep.subr.bf16.mxu0 %v653_v0 }
  0x60   :  { %469 = vmatpush3.bf16.msra.mxu1 %v514_v10 }
  0x61   :  { %470 = vmatprep.subr.bf16.mxu1 %v653_v0  ;;  %485 = vmatpush3.bf16.msra.mxu0 %v520_v16 }
  0x62   :  { %486 = vmatprep.subr.bf16.mxu0 %v653_v0 }
  0x64   :  { %471 = vmatpush3.bf16.msra.mxu1 %v515_v11 }
  0x65   :  { %472 = vmatprep.subr.bf16.mxu1 %v653_v0  ;;  %487 = vmatpush3.bf16.msra.mxu0 %v521_v17 }
  0x66   :  { %488 = vmatprep.subr.bf16.mxu0 %v653_v0 }
  0x68   :  { %473 = vmatpush3.bf16.msra.mxu1 %v516_v12 }
  0x69   :  { %489 = vmatpush3.bf16.msra.mxu0 %v522_v18 }
  0x6a   :  { %490 = vmatprep.subr.bf16.mxu0 %v653_v0 }
  0x6d   :  { %491 = vmatpush3.bf16.msra.mxu0 %v523_v27 }
  0x6e   :  { %492 = vmatprep.subr.bf16.mxu0 %v653_v0 }
  0x71   :  { %493 = vmatpush3.bf16.msra.mxu0 %v524_v28 }
 0x126   :  { %v144_v20 = vpop.f32.mrb[0].mxu0 }
 0x127   :  { %v145_v21 = vadd.f32 %v407_v19, %v144_v20  ;;  %v456_v22 = vpop.f32.mrb[1].mxu0 }
 0x128   :  { %v147_v23 = vpop.f32.mrb[2].mxu0 }
 0x129   :  { %v150_v24 = vmax.f32 %v145_v21, 0.0  ;;  %v457_v25 = vpop.f32.mrb[3].mxu0 }
 0x12b   :  { %v151_v26 = vpack.c.bf16 %v150_v24, %v150_v24 }
 0x12d   :  { %475 = vmatmul.mubr.bf16.vlgmr.msra.gmra.mrb[0].mxu1 %v151_v26 }
 0x200   :  { %v257_v30 = vpop.f32.mrb[0].mxu1 }
 0x201   :  { %v258_v31 = vadd.f32 %v411_v29, %v257_v30  ;;  %v476_v32 = vpop.f32.mrb[1].mxu1 }
 0x202   :  { %v260_v33 = vpop.f32.mrb[2].mxu1 }
 0x203   :  { %v263_v34 = vmax.f32 %v258_v31, 0.0  ;;  %v477_v35 = vpop.f32.mrb[3].mxu1 }
 0x205   :  { %v264_v36 = vpack.c.bf16 %v263_v34, %v263_v34 }
 0x207   :  { %495 = vmatmul.mubr.bf16.vlgmr.msra.gmra.mrb[4].mxu0 %v264_v36 }
 0x2da   :  { %v370_v38 = vpop.f32.mrb[4].mxu0 }
 0x2db   :  { %v371_v39 = vadd.f32 %v420_v37, %v370_v38  ;;  %v496_v40 = vpop.f32.mrb[5].mxu0 }
 0x2dc   :  { %v373_v41 = vpop.f32.mrb[6].mxu0 }
 0x2dd   :  { %v497_v42 = vpop.f32.mrb[7].mxu0  ;;  %v377_v43 = vsel %vm376_vm2, %v371_v39, -inf }
 0x2de   :  { %378 = vmax.xlane.f32.xlu0 %v377_v43 }
 0x36b   :  { %v379_v44 = vpop.xlane.xlu0 %378 }
 0x36c   :  { %v380_v45 = vsub.f32 %v371_v39, %v379_v44 }
 0x36e   :  { %v381_v46 = vmul.f32 1.442695, %v380_v45 }
 0x370   :  { %525 = vpow2.f32 %v381_v46 }
 0x37a   :  { %v526_v47 = vpop.eup %525 }
 0x37b   :  { %v383_v48 = vsel %vm376_vm2, %v526_v47, 0.0 }
 0x37c   :  { %384 = vadd.xlane.f32.xlu0 %v383_v48 }
 0x409   :  { %v385_v49 = vpop.xlane.xlu0 %384 }
 0x40a   :  { %527 = vrcp.f32 %v385_v49 }
 0x414   :  { %v528_v50 = vpop.eup %527 }
 0x415   :  { %v387_v51 = vmul.f32 %v528_v50, %v526_v47 }
 0x417   :  { %389 = vst.msk [vmem:[#allocation10] sm:$0xf] %vm388_vm3, %v387_v51 }
 0x418   :  { %628 = shalt.err (!%p625_p8)
}
 0x419   :  { %s629_s8 = scalar_lea.hbm %s805_s7, 64 }
 0x41a   :  { %p630_p9 = scmp.ne.s32.totalorder %s805_s7, %s629_s8  ;;  %p633_p10 = scmp.lt.u32.totalorder %s629_s8, %s805_s7 }
 0x41c   :  { %p635_p11 = pnand %p633_p10, %p630_p9 }
 0x41e   :  { %638 = shalt.err (!%p635_p11)
}
 0x41f   :  { %399 = dma.vmem_to_hbm [thread:$0]  %s397_s28, 64, %s805_s7, [#allocation4]  }
 0x420   :  { %645 = dma.done.wait [#allocation4], 64  }
 0x421   :  { %646 = vsyncadd [#allocation4], 4294967232 }
 0x422   :  { %403 = vsyncpa [#allocation3], 1 }
 0x423   :  { %404 = vsyncpa [#allocation6], 1 }
 0x424   :  { %405 = vsyncpa [#allocation9], 1 }
 0x425   :  { %406 = vsyncpa [#allocation4], 1 }

</bundles_post_ra>
